<compile_context>
chip_gen: v6e
topology: v6e:2x2x1
jax: 0.10.0
libtpu: 0.0.40
codegen_flags: <defaults>
</compile_context>

<pallas_src>
import jax
import jax.numpy as jnp
from jax.experimental import pallas as pl
from jax.experimental.pallas import tpu as pltpu

BN_EPS = 1e-5


def _round_up(x, m):
    return (x + m - 1) // m * m


# ----------------------------- Pallas kernel ------------------------------ #
def make_deepfm_kernel(F, n_layers):
    """Kernel factory.

    Ref layout per grid step (one batch tile of TB rows):
      emb_ref    (F, TB, E)   stacked field embeddings
      numb_ref   (TB, Dn)     numerical features
      first_ref  (TB, F)      FM first-order terms
      F x w0f    (E, H1)      fused layer-0 weight, per-field row slices
      w0n        (Dn, H1)     fused layer-0 weight, numeric row slice
      b0         (1, H1)      fused layer-0 bias
      (n_layers-1) x [W_i (H_i, H_{i+1}), b_i (1, H_{i+1})]   fused layers
      wp_first   (1, F)       predict-head weight slices (row vectors)
      wp_second  (1, E)
      wp_deep    (1, H_last)
      bp         (1, 1)       predict bias (SMEM scalar)
      out_ref    (TB, 1)
    """

    def kernel(*refs):
        it = iter(refs)
        emb_ref = next(it)
        numb_ref = next(it)
        first_ref = next(it)
        w0f_refs = [next(it) for _ in range(F)]
        w0n_ref = next(it)
        b0_ref = next(it)
        layer_refs = [(next(it), next(it)) for _ in range(n_layers - 1)]
        wpf_ref = next(it)
        wps_ref = next(it)
        wpd_ref = next(it)
        bp_ref = next(it)
        out_ref = next(it)

        # ---- single pass over fields: FM sums + fused first Linear ----
        # Layer 0 has BN0 (input BN) and BN1 (post-linear BN) already folded in,
        # and its weight is split per field, so no (TB, F*E) concat is needed.
        h = (jnp.dot(numb_ref[...], w0n_ref[...],
                     preferred_element_type=jnp.float32) + b0_ref[...])
        e = emb_ref[0]                               # (TB, E)
        sum_emb = e
        sq_sum = e * e
        h = h + jnp.dot(e, w0f_refs[0][...], preferred_element_type=jnp.float32)
        for f in range(1, F):                        # static unroll, F is tiny
            e = emb_ref[f]
            sum_emb = sum_emb + e
            sq_sum = sq_sum + e * e
            h = h + jnp.dot(e, w0f_refs[f][...],
                            preferred_element_type=jnp.float32)
        second = 0.5 * (sum_emb * sum_emb - sq_sum)  # (TB, E)

        # ---- remaining fused (Linear + BN) layers; Dropout is identity in eval ----
        x = h
        for (w_ref, b_ref) in layer_refs:
            x = jnp.dot(x, w_ref[...],
                        preferred_element_type=jnp.float32) + b_ref[...]

        # ---- predict head: VPU multiply + lane reduce (no N=1 MXU matvecs) ----
        logit = (jnp.sum(first_ref[...] * wpf_ref[...], axis=-1, keepdims=True)
                 + jnp.sum(second * wps_ref[...], axis=-1, keepdims=True)
                 + jnp.sum(x * wpd_ref[...], axis=-1, keepdims=True)
                 + bp_ref[0, 0])

        # numerically stable sigmoid (exp of a non-positive argument only)
        p = 1.0 / (1.0 + jnp.exp(-jnp.abs(logit)))
        out_ref[...] = jnp.where(logit >= 0.0, p, 1.0 - p)

    return kernel


# ------------------------------- wrapper ----------------------------------- #
def _bn_affine(bn):
    scale = bn["gamma"] / jnp.sqrt(bn["var"] + BN_EPS)
    shift = bn["beta"] - bn["mean"] * scale
    return scale, shift


def deepfm_forward(params, numb_features, features, fea_names, hidden_dims,
                   emb_dim, tile_b=None):
    B = numb_features.shape[0]
    F = len(fea_names)
    E = emb_dim
    numb_dim = numb_features.shape[1]
    n_layers = len(hidden_dims)

    # --- glue: embedding gathers (plain JAX). Embeddings stay stacked as
    # (F, B, E) so the kernel reduces over the major field axis.
    emb = jnp.stack([params["emb"][n][features[n]] for n in fea_names], axis=0)
    first = jnp.concatenate(
        [params["fm_first"][n][features[n]] for n in fea_names], axis=1)

    # --- fold eval-mode BatchNorms into the Linear weights / biases ---
    s0, t0 = _bn_affine(params["bn0"])
    fused_w, fused_b = [], []
    for i in range(n_layers):
        w = params["linear"][i]["w"]          # (din, dout)
        b = params["linear"][i]["b"]          # (dout,)
        sh, th = _bn_affine(params["bn"][i])  # BN after Linear_i
        if i == 0:                            # fold BN0 (input BN) into layer 0
            b = t0 @ w + b
            w = s0[:, None] * w
        w = w * sh[None, :]
        b = b * sh + th
        fused_w.append(w)
        fused_b.append(b[None, :])

    # split layer-0 weight by field / numeric rows (avoids in-kernel concat)
    w0 = fused_w[0]
    w0_fields = [w0[f * E:(f + 1) * E, :] for f in range(F)]
    w0_numb = w0[F * E:, :]

    # predict-head weight split into row vectors for VPU mul + lane-reduce
    wp = params["predict"]["w"][:, 0]
    wp_first = wp[:F][None, :]
    wp_second = wp[F:F + E][None, :]
    wp_deep = wp[F + E:][None, :]
    bp = params["predict"]["b"].reshape(1, 1)

    # --- batch tiling (TILE_B multiple of 8; pad B up to a tile multiple) ---
    if tile_b is None:
        tile_b = 512 if B > 512 else B
    tile_b = _round_up(tile_b, 8)
    B_pad = _round_up(B, tile_b)
    pad = B_pad - B
    if pad:
        emb = jnp.pad(emb, ((0, 0), (0, pad), (0, 0)))
        numb_features = jnp.pad(numb_features, ((0, pad), (0, 0)))
        first = jnp.pad(first, ((0, pad), (0, 0)))
    grid = (B_pad // tile_b,)

    def resident(a):
        # full-array block, constant block index -> fetched once, stays in VMEM
        nd = a.ndim
        return pl.BlockSpec(a.shape, lambda i, nd=nd: (0,) * nd)

    data_args = [emb, numb_features, first]
    data_specs = [
        pl.BlockSpec((F, tile_b, E), lambda i: (0, i, 0)),
        pl.BlockSpec((tile_b, numb_dim), lambda i: (i, 0)),
        pl.BlockSpec((tile_b, F), lambda i: (i, 0)),
    ]

    weight_args = (w0_fields + [w0_numb, fused_b[0]]
                   + [a for i in range(1, n_layers)
                      for a in (fused_w[i], fused_b[i])]
                   + [wp_first, wp_second, wp_deep])
    weight_specs = [resident(a) for a in weight_args]

    smem_args = [bp]
    smem_specs = [pl.BlockSpec(memory_space=pltpu.MemorySpace.SMEM)]

    args = data_args + weight_args + smem_args
    in_specs = data_specs + weight_specs + smem_specs

    kernel = make_deepfm_kernel(F, n_layers)
    out = pl.pallas_call(
        kernel,
        grid=grid,
        out_shape=jax.ShapeDtypeStruct((B_pad, 1), jnp.float32),
        in_specs=in_specs,
        out_specs=pl.BlockSpec((tile_b, 1), lambda i: (i, 0)),
        compiler_params=pltpu.CompilerParams(
            dimension_semantics=("parallel",)),
    )(*args)
    return out[:B]


# ---------------------------- pure-JAX reference --------------------------- #
def deepfm_reference(params, numb_features, features, fea_names, hidden_dims, emb_dim):
    emb_list = [params["emb"][n][features[n]] for n in fea_names]
    first = jnp.concatenate(
        [params["fm_first"][n][features[n]] for n in fea_names], axis=1)
    emb_flat = jnp.concatenate(emb_list, axis=1)
    sum_emb = sum(emb_list)
    sq_sum = sum(e * e for e in emb_list)
    second = 0.5 * (sum_emb * sum_emb - sq_sum)

    def bn(x, p):
        return (x - p["mean"]) / jnp.sqrt(p["var"] + BN_EPS) * p["gamma"] + p["beta"]

    x = jnp.concatenate([emb_flat, numb_features], axis=1)
    x = bn(x, params["bn0"])
    for i in range(len(hidden_dims)):
        x = x @ params["linear"][i]["w"] + params["linear"][i]["b"]
        x = bn(x, params["bn"][i])
    z = jnp.concatenate([first, second, x], axis=1)
    logit = z @ params["predict"]["w"] + params["predict"]["b"]
    return jax.nn.sigmoid(logit)


# ------------------------------- param init -------------------------------- #
def init_params(key, fea_nums_dict, emb_dim, numb_dim, hidden_dims):
    fea_names = list(fea_nums_dict.keys())
    F = len(fea_names)
    input_dim = F * emb_dim + numb_dim
    dims = [input_dim] + list(hidden_dims)

    params = {"emb": {}, "fm_first": {}, "linear": [], "bn": []}
    for n in fea_names:
        key, k1, k2 = jax.random.split(key, 3)
        params["emb"][n] = jax.random.normal(k1, (fea_nums_dict[n], emb_dim), jnp.float32)
        params["fm_first"][n] = jax.random.normal(k2, (fea_nums_dict[n], 1), jnp.float32)

    def bn_params(d):
        return {"gamma": jnp.ones((d,), jnp.float32),
                "beta": jnp.zeros((d,), jnp.float32),
                "mean": jnp.zeros((d,), jnp.float32),
                "var": jnp.ones((d,), jnp.float32)}

    params["bn0"] = bn_params(input_dim)
    for i in range(len(hidden_dims)):
        key, k1, k2 = jax.random.split(key, 3)
        fan_in = dims[i]
        bound = 1.0 / jnp.sqrt(fan_in)
        params["linear"].append({
            "w": jax.random.uniform(k1, (dims[i], dims[i + 1]), jnp.float32, -bound, bound),
            "b": jax.random.uniform(k2, (dims[i + 1],), jnp.float32, -bound, bound),
        })
        params["bn"].append(bn_params(dims[i + 1]))

    pred_in = hidden_dims[-1] + emb_dim + F
    key, k1, k2 = jax.random.split(key, 3)
    bound = 1.0 / jnp.sqrt(pred_in)
    params["predict"] = {
        "w": jax.random.uniform(k1, (pred_in, 1), jnp.float32, -bound, bound),
        "b": jax.random.uniform(k2, (1,), jnp.float32, -bound, bound),
    }
    return params, fea_names


# ---------------------------------- main ----------------------------------- #
if __name__ == "__main__":
    key = jax.random.PRNGKey(0)

    fea_nums_dict = {"user": 11, "item": 23, "cate": 7}
    emb_dim = 8
    numb_dim = 4
    hidden_dims = [32, 16]
    dropouts = [0.1, 0.2]          # identity in eval mode
    B = 8

    key, kp, kn, ku, ki, kc = jax.random.split(key, 6)
    params, fea_names = init_params(kp, fea_nums_dict, emb_dim, numb_dim, hidden_dims)

    numb_features = jax.random.normal(kn, (B, numb_dim), jnp.float32)
    features = {
        "user": jax.random.randint(ku, (B,), 0, fea_nums_dict["user"], jnp.int32),
        "item": jax.random.randint(ki, (B,), 0, fea_nums_dict["item"], jnp.int32),
        "cate": jax.random.randint(kc, (B,), 0, fea_nums_dict["cate"], jnp.int32),
    }

    out = deepfm_forward(params, numb_features, features, fea_names, hidden_dims, emb_dim)
    out = jax.block_until_ready(out)
    ref = deepfm_reference(params, numb_features, features, fea_names, hidden_dims, emb_dim)
    assert out.shape == (B, 1), out.shape
    assert jnp.allclose(out, ref, atol=1e-4, rtol=1e-4), (out, ref)

    # second check: multi-tile grid (3 tiles) with batch padding (44 -> 48)
    B2 = 44
    key, kn2, ku2, ki2, kc2 = jax.random.split(key, 5)
    numb2 = jax.random.normal(kn2, (B2, numb_dim), jnp.float32)
    feats2 = {
        "user": jax.random.randint(ku2, (B2,), 0, fea_nums_dict["user"], jnp.int32),
        "item": jax.random.randint(ki2, (B2,), 0, fea_nums_dict["item"], jnp.int32),
        "cate": jax.random.randint(kc2, (B2,), 0, fea_nums_dict["cate"], jnp.int32),
    }
    out2 = jax.block_until_ready(
        deepfm_forward(params, numb2, feats2, fea_names, hidden_dims, emb_dim, tile_b=16))
    ref2 = deepfm_reference(params, numb2, feats2, fea_names, hidden_dims, emb_dim)
    assert out2.shape == (B2, 1), out2.shape
    assert jnp.allclose(out2, ref2, atol=1e-4, rtol=1e-4), (out2, ref2)

    print("KERNEL_OK")
</pallas_src>

<mosaic_0001>
module attributes {stable_mosaic.version = 11 : i64} {
  func.func @kernel(%arg0: i32, %arg1: memref<3x8x8xf32, #tpu.memory_space<vmem>>, %arg2: memref<8x4xf32, #tpu.memory_space<vmem>>, %arg3: memref<8x3xf32, #tpu.memory_space<vmem>>, %arg4: memref<8x32xf32, #tpu.memory_space<vmem>>, %arg5: memref<8x32xf32, #tpu.memory_space<vmem>>, %arg6: memref<8x32xf32, #tpu.memory_space<vmem>>, %arg7: memref<4x32xf32, #tpu.memory_space<vmem>>, %arg8: memref<1x32xf32, #tpu.memory_space<vmem>>, %arg9: memref<32x16xf32, #tpu.memory_space<vmem>>, %arg10: memref<1x16xf32, #tpu.memory_space<vmem>>, %arg11: memref<1x3xf32, #tpu.memory_space<vmem>>, %arg12: memref<1x8xf32, #tpu.memory_space<vmem>>, %arg13: memref<1x16xf32, #tpu.memory_space<vmem>>, %arg14: memref<1x1xf32, #tpu.memory_space<smem>>, %arg15: memref<8x1xf32, #tpu.memory_space<vmem>>) attributes {dimension_semantics = [#tpu.dimension_semantics<parallel>], iteration_bounds = array<i64: 1>, scalar_prefetch = 0 : i64, scratch_operands = 0 : i64, tpu.core_type = #tpu.core_type<tc>, window_params = [{transform_indices = @transform_0, window_bounds = array<i64: 3, 8, 8>}, {transform_indices = @transform_1, window_bounds = array<i64: 8, 4>}, {transform_indices = @transform_2, window_bounds = array<i64: 8, 3>}, {pipeline_mode = #tpu.pipeline_mode<synchronous>, transform_indices = @transform_3, window_bounds = array<i64: 8, 32>}, {pipeline_mode = #tpu.pipeline_mode<synchronous>, transform_indices = @transform_4, window_bounds = array<i64: 8, 32>}, {pipeline_mode = #tpu.pipeline_mode<synchronous>, transform_indices = @transform_5, window_bounds = array<i64: 8, 32>}, {pipeline_mode = #tpu.pipeline_mode<synchronous>, transform_indices = @transform_6, window_bounds = array<i64: 4, 32>}, {pipeline_mode = #tpu.pipeline_mode<synchronous>, transform_indices = @transform_7, window_bounds = array<i64: 1, 32>}, {pipeline_mode = #tpu.pipeline_mode<synchronous>, transform_indices = @transform_8, window_bounds = array<i64: 32, 16>}, {pipeline_mode = #tpu.pipeline_mode<synchronous>, transform_indices = @transform_9, window_bounds = array<i64: 1, 16>}, {pipeline_mode = #tpu.pipeline_mode<synchronous>, transform_indices = @transform_10, window_bounds = array<i64: 1, 3>}, {pipeline_mode = #tpu.pipeline_mode<synchronous>, transform_indices = @transform_11, window_bounds = array<i64: 1, 8>}, {pipeline_mode = #tpu.pipeline_mode<synchronous>, transform_indices = @transform_12, window_bounds = array<i64: 1, 16>}, {transform_indices = @transform_13, window_bounds = array<i64: 1, 1>}, {transform_indices = @transform_14, window_bounds = array<i64: 8, 1>}]} {
    %c0 = arith.constant 0 : index
    %c0_0 = arith.constant 0 : index
    %0 = vector.load %arg2[%c0, %c0_0] : memref<8x4xf32, #tpu.memory_space<vmem>>, vector<8x4xf32>
    %c0_1 = arith.constant 0 : index
    %c0_2 = arith.constant 0 : index
    %1 = vector.load %arg7[%c0_1, %c0_2] : memref<4x32xf32, #tpu.memory_space<vmem>>, vector<4x32xf32>
    %cst = arith.constant dense<0.000000e+00> : vector<8x32xf32>
    %2 = tpu.matmul %0, %1, %cst {dimension_numbers = #tpu.dot_dimension_numbers<[1], [0], [0], [1], [0, 0, 1, 1], [], []>} : vector<8x4xf32>, vector<4x32xf32>, vector<8x32xf32> -> vector<8x32xf32>
    %c0_3 = arith.constant 0 : index
    %c0_4 = arith.constant 0 : index
    %3 = vector.load %arg8[%c0_3, %c0_4] : memref<1x32xf32, #tpu.memory_space<vmem>>, vector<1x32xf32>
    %4 = vector.broadcast %3 : vector<1x32xf32> to vector<8x32xf32>
    %5 = arith.addf %2, %4 : vector<8x32xf32>
    %c0_5 = arith.constant 0 : index
    %c0_6 = arith.constant 0 : index
    %c0_7 = arith.constant 0 : index
    %6 = vector.load %arg1[%c0_5, %c0_6, %c0_7] : memref<3x8x8xf32, #tpu.memory_space<vmem>>, vector<1x8x8xf32>
    %7 = vector.shape_cast %6 : vector<1x8x8xf32> to vector<8x8xf32>
    %8 = arith.mulf %7, %7 : vector<8x8xf32>
    %c0_8 = arith.constant 0 : index
    %c0_9 = arith.constant 0 : index
    %9 = vector.load %arg4[%c0_8, %c0_9] : memref<8x32xf32, #tpu.memory_space<vmem>>, vector<8x32xf32>
    %cst_10 = arith.constant dense<0.000000e+00> : vector<8x32xf32>
    %10 = tpu.matmul %7, %9, %cst_10 {dimension_numbers = #tpu.dot_dimension_numbers<[1], [0], [0], [1], [0, 0, 1, 1], [], []>} : vector<8x8xf32>, vector<8x32xf32>, vector<8x32xf32> -> vector<8x32xf32>
    %11 = arith.addf %5, %10 : vector<8x32xf32>
    %c1 = arith.constant 1 : index
    %c0_11 = arith.constant 0 : index
    %c0_12 = arith.constant 0 : index
    %12 = vector.load %arg1[%c1, %c0_11, %c0_12] : memref<3x8x8xf32, #tpu.memory_space<vmem>>, vector<1x8x8xf32>
    %13 = vector.shape_cast %12 : vector<1x8x8xf32> to vector<8x8xf32>
    %14 = arith.addf %7, %13 : vector<8x8xf32>
    %15 = arith.mulf %13, %13 : vector<8x8xf32>
    %16 = arith.addf %8, %15 : vector<8x8xf32>
    %c0_13 = arith.constant 0 : index
    %c0_14 = arith.constant 0 : index
    %17 = vector.load %arg5[%c0_13, %c0_14] : memref<8x32xf32, #tpu.memory_space<vmem>>, vector<8x32xf32>
    %cst_15 = arith.constant dense<0.000000e+00> : vector<8x32xf32>
    %18 = tpu.matmul %13, %17, %cst_15 {dimension_numbers = #tpu.dot_dimension_numbers<[1], [0], [0], [1], [0, 0, 1, 1], [], []>} : vector<8x8xf32>, vector<8x32xf32>, vector<8x32xf32> -> vector<8x32xf32>
    %19 = arith.addf %11, %18 : vector<8x32xf32>
    %c2 = arith.constant 2 : index
    %c0_16 = arith.constant 0 : index
    %c0_17 = arith.constant 0 : index
    %20 = vector.load %arg1[%c2, %c0_16, %c0_17] : memref<3x8x8xf32, #tpu.memory_space<vmem>>, vector<1x8x8xf32>
    %21 = vector.shape_cast %20 : vector<1x8x8xf32> to vector<8x8xf32>
    %22 = arith.addf %14, %21 : vector<8x8xf32>
    %23 = arith.mulf %21, %21 : vector<8x8xf32>
    %24 = arith.addf %16, %23 : vector<8x8xf32>
    %c0_18 = arith.constant 0 : index
    %c0_19 = arith.constant 0 : index
    %25 = vector.load %arg6[%c0_18, %c0_19] : memref<8x32xf32, #tpu.memory_space<vmem>>, vector<8x32xf32>
    %cst_20 = arith.constant dense<0.000000e+00> : vector<8x32xf32>
    %26 = tpu.matmul %21, %25, %cst_20 {dimension_numbers = #tpu.dot_dimension_numbers<[1], [0], [0], [1], [0, 0, 1, 1], [], []>} : vector<8x8xf32>, vector<8x32xf32>, vector<8x32xf32> -> vector<8x32xf32>
    %27 = arith.addf %19, %26 : vector<8x32xf32>
    %28 = arith.mulf %22, %22 : vector<8x8xf32>
    %29 = arith.subf %28, %24 : vector<8x8xf32>
    %cst_21 = arith.constant 5.000000e-01 : f32
    %30 = vector.broadcast %cst_21 : f32 to vector<8x8xf32>
    %31 = arith.mulf %30, %29 : vector<8x8xf32>
    %c0_22 = arith.constant 0 : index
    %c0_23 = arith.constant 0 : index
    %32 = vector.load %arg9[%c0_22, %c0_23] : memref<32x16xf32, #tpu.memory_space<vmem>>, vector<32x16xf32>
    %cst_24 = arith.constant dense<0.000000e+00> : vector<8x16xf32>
    %33 = tpu.matmul %27, %32, %cst_24 {dimension_numbers = #tpu.dot_dimension_numbers<[1], [0], [0], [1], [0, 0, 1, 1], [], []>} : vector<8x32xf32>, vector<32x16xf32>, vector<8x16xf32> -> vector<8x16xf32>
    %c0_25 = arith.constant 0 : index
    %c0_26 = arith.constant 0 : index
    %34 = vector.load %arg10[%c0_25, %c0_26] : memref<1x16xf32, #tpu.memory_space<vmem>>, vector<1x16xf32>
    %35 = vector.broadcast %34 : vector<1x16xf32> to vector<8x16xf32>
    %36 = arith.addf %33, %35 : vector<8x16xf32>
    %c0_27 = arith.constant 0 : index
    %c0_28 = arith.constant 0 : index
    %37 = vector.load %arg3[%c0_27, %c0_28] : memref<8x3xf32, #tpu.memory_space<vmem>>, vector<8x3xf32>
    %c0_29 = arith.constant 0 : index
    %c0_30 = arith.constant 0 : index
    %38 = vector.load %arg11[%c0_29, %c0_30] : memref<1x3xf32, #tpu.memory_space<vmem>>, vector<1x3xf32>
    %39 = vector.broadcast %38 : vector<1x3xf32> to vector<8x3xf32>
    %40 = arith.mulf %37, %39 : vector<8x3xf32>
    %cst_31 = arith.constant dense<0.000000e+00> : vector<8xf32>
    %41 = vector.multi_reduction <add>, %40, %cst_31 [1] : vector<8x3xf32> to vector<8xf32>
    %42 = vector.shape_cast %41 : vector<8xf32> to vector<8x1xf32>
    %c0_32 = arith.constant 0 : index
    %c0_33 = arith.constant 0 : index
    %43 = vector.load %arg12[%c0_32, %c0_33] : memref<1x8xf32, #tpu.memory_space<vmem>>, vector<1x8xf32>
    %44 = vector.broadcast %43 : vector<1x8xf32> to vector<8x8xf32>
    %45 = arith.mulf %31, %44 : vector<8x8xf32>
    %cst_34 = arith.constant dense<0.000000e+00> : vector<8xf32>
    %46 = vector.multi_reduction <add>, %45, %cst_34 [1] : vector<8x8xf32> to vector<8xf32>
    %47 = vector.shape_cast %46 : vector<8xf32> to vector<8x1xf32>
    %48 = arith.addf %42, %47 : vector<8x1xf32>
    %c0_35 = arith.constant 0 : index
    %c0_36 = arith.constant 0 : index
    %49 = vector.load %arg13[%c0_35, %c0_36] : memref<1x16xf32, #tpu.memory_space<vmem>>, vector<1x16xf32>
    %50 = vector.broadcast %49 : vector<1x16xf32> to vector<8x16xf32>
    %51 = arith.mulf %36, %50 : vector<8x16xf32>
    %cst_37 = arith.constant dense<0.000000e+00> : vector<8xf32>
    %52 = vector.multi_reduction <add>, %51, %cst_37 [1] : vector<8x16xf32> to vector<8xf32>
    %53 = vector.shape_cast %52 : vector<8xf32> to vector<8x1xf32>
    %54 = arith.addf %48, %53 : vector<8x1xf32>
    %c0_38 = arith.constant 0 : index
    %c0_39 = arith.constant 0 : index
    %55 = memref.load %arg14[%c0_38, %c0_39] : memref<1x1xf32, #tpu.memory_space<smem>>
    %56 = vector.broadcast %55 : f32 to vector<8x1xf32>
    %57 = arith.addf %54, %56 : vector<8x1xf32>
    %58 = math.absf %57 : vector<8x1xf32>
    %cst_40 = arith.constant 0.000000e+00 : f32
    %59 = vector.broadcast %cst_40 : f32 to vector<8x1xf32>
    %60 = arith.subf %59, %58 : vector<8x1xf32>
    %61 = math.exp %60 : vector<8x1xf32>
    %cst_41 = arith.constant 1.000000e+00 : f32
    %62 = vector.broadcast %cst_41 : f32 to vector<8x1xf32>
    %63 = arith.addf %62, %61 : vector<8x1xf32>
    %cst_42 = arith.constant 1.000000e+00 : f32
    %64 = vector.broadcast %cst_42 : f32 to vector<8x1xf32>
    %65 = arith.divf %64, %63 : vector<8x1xf32>
    %cst_43 = arith.constant 0.000000e+00 : f32
    %66 = vector.broadcast %cst_43 : f32 to vector<8x1xf32>
    %67 = arith.cmpf oge, %57, %66 : vector<8x1xf32>
    %cst_44 = arith.constant 1.000000e+00 : f32
    %68 = vector.broadcast %cst_44 : f32 to vector<8x1xf32>
    %69 = arith.subf %68, %65 : vector<8x1xf32>
    %70 = arith.select %67, %65, %69 : vector<8x1xi1>, vector<8x1xf32>
    %c0_45 = arith.constant 0 : index
    %c0_46 = arith.constant 0 : index
    %71 = vector.load %arg15[%c0_45, %c0_46] : memref<8x1xf32, #tpu.memory_space<vmem>>, vector<8x1xf32>
    tpu.vector_store %arg15[%c0_45, %c0_46], %70 {strides = array<i32>} : memref<8x1xf32, #tpu.memory_space<vmem>>, vector<8x1xf32>,
    return
  }
  func.func @transform_0(%arg0: i32) -> (i32, i32, i32) {
    %c0_i32 = arith.constant 0 : i32
    %c0_i32_0 = arith.constant 0 : i32
    %c0_i32_1 = arith.constant 0 : i32
    return %c0_i32, %arg0, %c0_i32_0 : i32, i32, i32
  }
  func.func @transform_1(%arg0: i32) -> (i32, i32) {
    %c0_i32 = arith.constant 0 : i32
    %c0_i32_0 = arith.constant 0 : i32
    return %arg0, %c0_i32 : i32, i32
  }
  func.func @transform_2(%arg0: i32) -> (i32, i32) {
    %c0_i32 = arith.constant 0 : i32
    %c0_i32_0 = arith.constant 0 : i32
    return %arg0, %c0_i32 : i32, i32
  }
  func.func @transform_3(%arg0: i32) -> (i32, i32) {
    %c0_i32 = arith.constant 0 : i32
    %c0_i32_0 = arith.constant 0 : i32
    %c0_i32_1 = arith.constant 0 : i32
    return %c0_i32, %c0_i32_0 : i32, i32
  }
  func.func @transform_4(%arg0: i32) -> (i32, i32) {
    %c0_i32 = arith.constant 0 : i32
    %c0_i32_0 = arith.constant 0 : i32
    %c0_i32_1 = arith.constant 0 : i32
    return %c0_i32, %c0_i32_0 : i32, i32
  }
  func.func @transform_5(%arg0: i32) -> (i32, i32) {
    %c0_i32 = arith.constant 0 : i32
    %c0_i32_0 = arith.constant 0 : i32
    %c0_i32_1 = arith.constant 0 : i32
    return %c0_i32, %c0_i32_0 : i32, i32
  }
  func.func @transform_6(%arg0: i32) -> (i32, i32) {
    %c0_i32 = arith.constant 0 : i32
    %c0_i32_0 = arith.constant 0 : i32
    %c0_i32_1 = arith.constant 0 : i32
    return %c0_i32, %c0_i32_0 : i32, i32
  }
  func.func @transform_7(%arg0: i32) -> (i32, i32) {
    %c0_i32 = arith.constant 0 : i32
    %c0_i32_0 = arith.constant 0 : i32
    %c0_i32_1 = arith.constant 0 : i32
    return %c0_i32, %c0_i32_0 : i32, i32
  }
  func.func @transform_8(%arg0: i32) -> (i32, i32) {
    %c0_i32 = arith.constant 0 : i32
    %c0_i32_0 = arith.constant 0 : i32
    %c0_i32_1 = arith.constant 0 : i32
    return %c0_i32, %c0_i32_0 : i32, i32
  }
  func.func @transform_9(%arg0: i32) -> (i32, i32) {
    %c0_i32 = arith.constant 0 : i32
    %c0_i32_0 = arith.constant 0 : i32
    %c0_i32_1 = arith.constant 0 : i32
    return %c0_i32, %c0_i32_0 : i32, i32
  }
  func.func @transform_10(%arg0: i32) -> (i32, i32) {
    %c0_i32 = arith.constant 0 : i32
    %c0_i32_0 = arith.constant 0 : i32
    %c0_i32_1 = arith.constant 0 : i32
    return %c0_i32, %c0_i32_0 : i32, i32
  }
  func.func @transform_11(%arg0: i32) -> (i32, i32) {
    %c0_i32 = arith.constant 0 : i32
    %c0_i32_0 = arith.constant 0 : i32
    %c0_i32_1 = arith.constant 0 : i32
    return %c0_i32, %c0_i32_0 : i32, i32
  }
  func.func @transform_12(%arg0: i32) -> (i32, i32) {
    %c0_i32 = arith.constant 0 : i32
    %c0_i32_0 = arith.constant 0 : i32
    %c0_i32_1 = arith.constant 0 : i32
    return %c0_i32, %c0_i32_0 : i32, i32
  }
  func.func @transform_13(%arg0: i32) -> (i32, i32) {
    %c0_i32 = arith.constant 0 : i32
    %c0_i32_0 = arith.constant 0 : i32
    %c0_i32_1 = arith.constant 0 : i32
    return %c0_i32, %c0_i32_0 : i32, i32
  }
  func.func @transform_14(%arg0: i32) -> (i32, i32) {
    %c0_i32 = arith.constant 0 : i32
    %c0_i32_0 = arith.constant 0 : i32
    return %arg0, %c0_i32 : i32, i32
  }
}

</mosaic_0001>

<bundles_post_ra>
// kernel: tpu_custom_call.1
= control target key start
LH: loop header
LB: loop body
LE: loop exit
PB: predicated region body
PF: predicated region fallthrough
CT: control target
= control target key end

     0   :  { %vm61_vm0 = vcmask 1043456   ;;  %vm57_vm1 = vcmask 31744   ;;  %v581_v0 = vmov 0.0   ;;  %vm582_vm2 = vmmov 0   ;;  %s728_s6 = inlined_call_operand.vmem [shape: f32[4,32], index: 6, kind: input, shape index: {}]   ;;  %s729_s1 = inlined_call_operand.vmem [shape: f32[8,4], index: 1, kind: input, shape index: {}]   ;;  %s730_s3 = inlined_call_operand.vmem [shape: f32[8,32], index: 3, kind: input, shape index: {}]   ;;  %s731_s0 = inlined_call_operand.vmem [shape: f32[3,8,8], index: 0, kind: input, shape index: {}]   ;;  %s732_s4 = inlined_call_operand.vmem [shape: f32[8,32], index: 4, kind: input, shape index: {}]   ;;  %s733_s5 = inlined_call_operand.vmem [shape: f32[8,32], index: 5, kind: input, shape index: {}]   ;;  %s734_s8 = inlined_call_operand.vmem [shape: f32[32,16], index: 8, kind: input, shape index: {}]   ;;  %s735_s2 = inlined_call_operand.vmem [shape: f32[8,3], index: 2, kind: input, shape index: {}]   ;;  %s736_s10 = inlined_call_operand.vmem [shape: f32[1,3], index: 10, kind: input, shape index: {}]   ;;  %s737_s7 = inlined_call_operand.vmem [shape: f32[1,32], index: 7, kind: input, shape index: {}]   ;;  %s738_s11 = inlined_call_operand.vmem [shape: f32[1,8], index: 11, kind: input, shape index: {}]   ;;  %s739_s9 = inlined_call_operand.vmem [shape: f32[1,16], index: 9, kind: input, shape index: {}]   ;;  %s740_s12 = inlined_call_operand.vmem [shape: f32[1,16], index: 12, kind: input, shape index: {}]   ;;  %s741_s13 = inlined_call_operand.<no memory space> [shape: f32[1,1], index: 13, kind: input, shape index: {}]   ;;  %s742_s14 = inlined_call_operand.vmem [shape: f32[8,1], index: 14, kind: output, shape index: {}]  }
   0x1   :  { %544 = vmatprep.subr.mxu1 %v581_v0  ;;  %v49_v1 = vld [vmem:[%s728_s6] sm:$0xf]  ;;  %546 = vmatprep.mubr.msk.f32.mxu1 %vm582_vm2, %v581_v0  ;;  %v522_v6 = vld [vmem:[%s731_s0 + $0x8] sm:$0xff]  ;;  %vm138_vm3 = vcmask 64512   ;;  %v524_v12 = vld [vmem:[%s731_s0 + $0x10] sm:$0xff]  ;;  %vm470_vm4 = vcmask 23552   ;;  %v500_v53 = vstv %s741_s13 }
   0x2   :  { %v48_v2 = vld [vmem:[%s729_s1] sm:$0xff]  ;;  %545 = vmatpush3.msk.msra.mxu1 %vm61_vm0, %v49_v1  ;;  %554 = vmatprep.subr.mxu0 %v581_v0  ;;  %v216_v9 = vmul.f32 %v522_v6, %v522_v6  ;;  %v379_v13 = vld [vmem:[%s734_s8 + $0x18] sm:$0xff]  ;;  %v378_v14 = vld [vmem:[%s734_s8 + $0x10] sm:$0xff]  ;;  %vm387_vm5 = vcmask 261120   ;;  %v296_v34 = vmul.f32 %v524_v12, %v524_v12  ;;  %vm494_vm6 = vcmask 130048  }
   0x3   :  { %v137_v3 = vld [vmem:[%s730_s3] sm:$0xff]  ;;  %547 = vmatmul.mubr.msk.f32.vlgmr.msra.gmra.mxu1 %vm57_vm1, %v48_v2  ;;  %549 = vmatprep.subr.mxu1 %v581_v0  ;;  %v377_v15 = vld [vmem:[%s734_s8 + $0x8] sm:$0xff]  ;;  %vm512_vm7 = vcmask 7168  }
   0x4   :  { %v135_v4 = vld [vmem:[%s731_s0] sm:$0xff]  ;;  %550 = vmatpush3.msra.mxu1 %v137_v3  ;;  %551 = vmatprep.mubr.msk.f32.mxu1 %vm582_vm2, %v581_v0 }
   0x5   :  { %v218_v5 = vld [vmem:[%s732_s4] sm:$0xff]  ;;  %v136_v7 = vmul.f32 %v135_v4, %v135_v4  ;;  %v215_v8 = vadd.f32 %v522_v6, %v135_v4  ;;  %556 = vmatprep.mubr.msk.f32.mxu0 %vm582_vm2, %v581_v0  ;;  %559 = vmatprep.subr.mxu1 %v581_v0 }
   0x6   :  { %555 = vmatpush3.msra.mxu0 %v218_v5  ;;  %v298_v11 = vld [vmem:[%s733_s5] sm:$0xff] }
   0x7   :  { %v217_v10 = vadd.f32 %v216_v9, %v136_v7  ;;  %557 = vmatmul.mubr.msk.f32.vlgmr.msra.gmra.mxu0 %vm138_vm3, %v522_v6  ;;  %552 = vmatmul.mubr.msk.f32.vlgmr.msra.gmra.mxu1 %vm138_vm3, %v135_v4  ;;  %v376_v16 = vld [vmem:[%s734_s8] sm:$0xff]  ;;  %v295_v35 = vadd.f32 %v524_v12, %v215_v8 }
   0x8   :  { %564 = vmatprep.subr.mxu0 %v581_v0  ;;  %560 = vmatpush3.msra.mxu1 %v298_v11  ;;  %v461_v17 = vld [vmem:[%s735_s2] sm:$0xff] }
   0x9   :  { %561 = vmatprep.mubr.msk.f32.mxu1 %vm582_vm2, %v581_v0  ;;  %572 = vmatprep.mubr.msk.f32.mxu0 %vm582_vm2, %v581_v0  ;;  %v528_v18 = vld [vmem:[%s736_s10] ss:$0 sm:$0xff]  ;;  %v297_v36 = vadd.f32 %v296_v34, %v217_v10  ;;  %v373_v37 = vmul.f32 %v295_v35, %v295_v35 }
   0xa   :  { %565 = vmatpush3.msra.mxu0 %v379_v13  ;;  %v469_v19 = vmul.f32 %v528_v18, %v461_v17  ;;  %v518_v21 = vld [vmem:[%s737_s7] ss:$0 sm:$0xff] }
   0xb   :  { %562 = vmatmul.mubr.msk.f32.vlgmr.msra.gmra.mxu1 %vm138_vm3, %v524_v12  ;;  %566 = vmatprep.subr.mxu0 %v581_v0  ;;  %v374_v38 = vsub.f32 %v373_v37, %v297_v36  ;;  %v529_v40 = vld [vmem:[%s738_s11] ss:$0 sm:$0xff] }
   0xc   :  { %567 = vmatpush3.msra.mxu0 %v378_v14  ;;  %v471_v20 = vsel %vm470_vm4, %v469_v19, 0.0  ;;  %v526_v43 = vld [vmem:[%s739_s9] ss:$0 sm:$0xff] }
   0xd   :  { %568 = vmatprep.subr.mxu0 %v581_v0  ;;  %472 = vadd.xlane.f32.xlu0 %v471_v20  ;;  %v375_v39 = vmul.f32 0.5, %v374_v38  ;;  %v530_v45 = vld [vmem:[%s740_s12] ss:$0 sm:$0xff] }
   0xe   :  { %569 = vmatpush3.msra.mxu0 %v377_v15 }
   0xf   :  { %570 = vmatprep.subr.mxu0 %v581_v0  ;;  %v481_v41 = vmul.f32 %v529_v40, %v375_v39 }
  0x10   :  { %571 = vmatpush3.msra.mxu0 %v376_v16 }
  0x11   :  { %v482_v42 = vsel %vm138_vm3, %v481_v41, 0.0 }
  0x12   :  { %483 = vadd.xlane.f32.xlu0 %v482_v42 }
  0x96   :  { %v473_v50 = vpop.xlane.xlu0 %472 }
  0x9b   :  { %v484_v51 = vpop.xlane.xlu0 %483 }
  0x9c   :  { %v485_v52 = vadd.f32 %v484_v51, %v473_v50 }
  0xc3   :  { %v131_v22 = vpop.f32.mrf.mxu1 }
  0xc4   :  { %v132_v24 = vadd.f32 %v518_v21, %v131_v22 }
  0xc5   :  { %v548_v23 = vpop.f32.mrf.mxu1 }
  0xc7   :  { %v288_v25 = vpop.f32.mrf.mxu0  ;;  %v208_v26 = vpop.f32.mrf.mxu1 }
  0xc8   :  { %v212_v27 = vadd.f32 %v208_v26, %v132_v24 }
  0xc9   :  { %v558_v28 = vpop.f32.mrf.mxu0  ;;  %v553_v29 = vpop.f32.mrf.mxu1 }
  0xca   :  { %v292_v30 = vadd.f32 %v288_v25, %v212_v27 }
  0xcb   :  { %v368_v31 = vpop.f32.mrf.mxu1 }
  0xcc   :  { %v372_v32 = vadd.f32 %v368_v31, %v292_v30 }
  0xcd   :  { %v563_v33 = vpop.f32.mrf.mxu1 }
  0xce   :  { %573 = vmatmul.mubr.msk.f32.vlgmr.msra.gmra.mxu0 %vm387_vm5, %v372_v32 }
 0x18e   :  { %v457_v44 = vpop.f32.mrf.mxu0 }
 0x18f   :  { %v458_v46 = vadd.f32 %v526_v43, %v457_v44 }
 0x190   :  { %v574_v47 = vpop.f32.mrf.mxu0 }
 0x191   :  { %v493_v48 = vmul.f32 %v530_v45, %v458_v46 }
 0x193   :  { %v495_v49 = vsel %vm494_vm6, %v493_v48, 0.0 }
 0x194   :  { %496 = vadd.xlane.f32.xlu1 %v495_v49 }
 0x21d   :  { %v497_v54 = vpop.xlane.xlu1 %496 }
 0x21e   :  { %v498_v55 = vadd.f32 %v497_v54, %v485_v52 }
 0x220   :  { %v501_v56 = vadd.f32 %v500_v53, %v498_v55 }
 0x222   :  { %v502_v57 = vand.u32 2147483647, %v501_v56  ;;  %vm509_vm8 = vcmp.ge.f32.partialorder %v501_v56, 0.0 }
 0x224   :  { %v503_v58 = vsub.f32 0.0, %v502_v57 }
 0x226   :  { %v504_v59 = vmul.f32 1.442695, %v503_v58 }
 0x228   :  { %577 = vpow2.f32 %v504_v59 }
 0x235   :  { %v578_v60 = vpop.eup %577 }
 0x236   :  { %v506_v61 = vadd.f32 1.0, %v578_v60 }
 0x238   :  { %579 = vrcp.f32 %v506_v61 }
 0x245   :  { %v580_v62 = vpop.eup %579 }
 0x246   :  { %v510_v63 = vsub.f32 1.0, %v580_v62 }
 0x248   :  { %v511_v0 = vsel %vm509_vm8, %v580_v62, %v510_v63 }
 0x249   :  { %513 = vst.msk [vmem:[%s742_s14] sm:$0xff] %vm512_vm7, %v511_v0 }

</bundles_post_ra>
